<compile_context>
chip_gen: v6e
topology: v6e:2x2x1
jax: 0.10.0
libtpu: 0.0.40
codegen_flags: <defaults>
</compile_context>

<pallas_src>
import jax
import jax.numpy as jnp
from jax.experimental import pallas as pl
from jax.experimental.pallas import tpu as pltpu


def _mean_kernel(x_ref, w_ref, b_ref, mean_ref):
    # x_ref: (TB, Ni)  w_ref: (Ni, No)  b_ref: (1, No)  mean_ref: (TB, No)
    acc = jnp.dot(x_ref[...], w_ref[...], preferred_element_type=jnp.float32)
    mean_ref[...] = (acc + b_ref[...]).astype(mean_ref.dtype)


def diag_gaussian_forward(x, w_t, bias, logstd, *, tb=1024):
    """Forward of DiagGaussian.

    Args:
      x:      [B, Ni]  activations.
      w_t:    [Ni, No] transposed Linear weight (W^T), so kernel does x @ W^T.
      bias:   [No]     Linear bias.
      logstd: [No]     AddBias parameter of the logstd head.
      tb:     batch tile size (rows per grid step) for large batches.

    Returns:
      (loc, scale): parameters of the FixedNormal distribution, each [B, No].
    """
    B, Ni = x.shape
    No = w_t.shape[1]
    bias2 = bias.reshape(1, No).astype(jnp.float32)

    # scale is independent of x: compute once on (No,) outside the kernel and
    # broadcast lazily (XLA fuses this; no extra kernel traffic).
    scale = jnp.broadcast_to(jnp.exp(logstd).reshape(1, No), (B, No)).astype(x.dtype)

    # Pick tiling: single full-array block for small batches, otherwise tile
    # the batch axis (TB rows per step, padded to a multiple of TB).
    if B <= tb:
        TB = B
        x_p = x
        n_tiles = 1
    else:
        TB = tb
        n_tiles = pl.cdiv(B, TB)
        pad = n_tiles * TB - B
        x_p = jnp.pad(x, ((0, pad), (0, 0))) if pad else x

    loc_p = pl.pallas_call(
        _mean_kernel,
        out_shape=jax.ShapeDtypeStruct((n_tiles * TB, No), x.dtype),
        grid=(n_tiles,),
        in_specs=[
            pl.BlockSpec((TB, Ni), lambda i: (i, 0)),   # x tile (pipelined)
            pl.BlockSpec((Ni, No), lambda i: (0, 0)),   # weights resident
            pl.BlockSpec((1, No), lambda i: (0, 0)),    # bias row resident
        ],
        out_specs=pl.BlockSpec((TB, No), lambda i: (i, 0)),
        compiler_params=pltpu.CompilerParams(
            dimension_semantics=("parallel",)),          # batch axis -> both TCs (v7x)
    )(x_p, w_t, bias2)

    loc = loc_p[:B] if loc_p.shape[0] != B else loc_p
    return loc, scale


def orthogonal_init(key, shape, gain):
    # Deterministic orthogonal init (matches nn.init.orthogonal_ up to RNG).
    n_rows, n_cols = shape
    a = jax.random.normal(key, (max(n_rows, n_cols), min(n_rows, n_cols)),
                          dtype=jnp.float32)
    q, r = jnp.linalg.qr(a)
    q = q * jnp.sign(jnp.diagonal(r))
    if n_rows < n_cols:
        q = q.T
    return gain * q[:n_rows, :n_cols]


def _reference(x, w_t, bias, logstd):
    loc = x @ w_t + bias[None, :]
    scale = jnp.exp(jnp.zeros_like(loc) + logstd[None, :])
    return loc, scale


if __name__ == "__main__":
    key = jax.random.PRNGKey(0)
    k_x, k_w, k_x2 = jax.random.split(key, 3)

    num_inputs = 32
    num_outputs = 8
    gain = 0.01

    # Parameters (mirroring DiagGaussian.__init__ shapes):
    #   fc_mean.weight: [num_outputs, num_inputs] (orthogonal, gain=0.01)
    #   fc_mean.bias:   [num_outputs]             (zeros)
    #   logstd bias:    [num_outputs]             (zeros)
    w = orthogonal_init(k_w, (num_outputs, num_inputs), gain)  # torch layout
    w_t = w.T                                                  # [Ni, No]
    bias = jnp.zeros((num_outputs,), jnp.float32)
    logstd = jnp.zeros((num_outputs,), jnp.float32)

    # --- small case: single full-array block path ---
    batch = 4
    x = jax.random.normal(k_x, (batch, num_inputs), dtype=jnp.float32)
    loc, scale = diag_gaussian_forward(x, w_t, bias, logstd)
    loc, scale = jax.block_until_ready((loc, scale))
    ref_loc, ref_scale = _reference(x, w_t, bias, logstd)
    assert jnp.allclose(loc, ref_loc, atol=1e-5, rtol=1e-5)
    assert jnp.allclose(scale, ref_scale, atol=1e-5, rtol=1e-5)

    # --- moderate case: exercises the batch grid + padding + parallel axis ---
    batch2 = 272  # -> 3 tiles of 128 with padding
    x2 = jax.random.normal(k_x2, (batch2, num_inputs), dtype=jnp.float32)
    loc2, scale2 = diag_gaussian_forward(x2, w_t, bias, logstd, tb=128)
    loc2, scale2 = jax.block_until_ready((loc2, scale2))
    ref_loc2, ref_scale2 = _reference(x2, w_t, bias, logstd)
    assert loc2.shape == (batch2, num_outputs)
    assert jnp.allclose(loc2, ref_loc2, atol=1e-5, rtol=1e-5)
    assert jnp.allclose(scale2, ref_scale2, atol=1e-5, rtol=1e-5)

    print("KERNEL_OK")
</pallas_src>

<mosaic_0001>
module attributes {stable_mosaic.version = 11 : i64} {
  func.func @_mean_kernel(%arg0: i32, %arg1: memref<4x32xf32, #tpu.memory_space<vmem>>, %arg2: memref<32x8xf32, #tpu.memory_space<vmem>>, %arg3: memref<1x8xf32, #tpu.memory_space<vmem>>, %arg4: memref<4x8xf32, #tpu.memory_space<vmem>>) attributes {dimension_semantics = [#tpu.dimension_semantics<parallel>], iteration_bounds = array<i64: 1>, scalar_prefetch = 0 : i64, scratch_operands = 0 : i64, tpu.core_type = #tpu.core_type<tc>, window_params = [{transform_indices = @transform_0, window_bounds = array<i64: 4, 32>}, {pipeline_mode = #tpu.pipeline_mode<synchronous>, transform_indices = @transform_1, window_bounds = array<i64: 32, 8>}, {pipeline_mode = #tpu.pipeline_mode<synchronous>, transform_indices = @transform_2, window_bounds = array<i64: 1, 8>}, {transform_indices = @transform_3, window_bounds = array<i64: 4, 8>}]} {
    %c0 = arith.constant 0 : index
    %c0_0 = arith.constant 0 : index
    %0 = vector.load %arg1[%c0, %c0_0] : memref<4x32xf32, #tpu.memory_space<vmem>>, vector<4x32xf32>
    %c0_1 = arith.constant 0 : index
    %c0_2 = arith.constant 0 : index
    %1 = vector.load %arg2[%c0_1, %c0_2] : memref<32x8xf32, #tpu.memory_space<vmem>>, vector<32x8xf32>
    %cst = arith.constant dense<0.000000e+00> : vector<4x8xf32>
    %2 = tpu.matmul %0, %1, %cst {dimension_numbers = #tpu.dot_dimension_numbers<[1], [0], [0], [1], [0, 0, 1, 1], [], []>} : vector<4x32xf32>, vector<32x8xf32>, vector<4x8xf32> -> vector<4x8xf32>
    %c0_3 = arith.constant 0 : index
    %c0_4 = arith.constant 0 : index
    %3 = vector.load %arg3[%c0_3, %c0_4] : memref<1x8xf32, #tpu.memory_space<vmem>>, vector<1x8xf32>
    %4 = vector.broadcast %3 : vector<1x8xf32> to vector<4x8xf32>
    %5 = arith.addf %2, %4 : vector<4x8xf32>
    %c0_5 = arith.constant 0 : index
    %c0_6 = arith.constant 0 : index
    %6 = vector.load %arg4[%c0_5, %c0_6] : memref<4x8xf32, #tpu.memory_space<vmem>>, vector<4x8xf32>
    tpu.vector_store %arg4[%c0_5, %c0_6], %5 {strides = array<i32>} : memref<4x8xf32, #tpu.memory_space<vmem>>, vector<4x8xf32>,
    return
  }
  func.func @transform_0(%arg0: i32) -> (i32, i32) {
    %c0_i32 = arith.constant 0 : i32
    %c0_i32_0 = arith.constant 0 : i32
    return %arg0, %c0_i32 : i32, i32
  }
  func.func @transform_1(%arg0: i32) -> (i32, i32) {
    %c0_i32 = arith.constant 0 : i32
    %c0_i32_0 = arith.constant 0 : i32
    %c0_i32_1 = arith.constant 0 : i32
    return %c0_i32, %c0_i32_0 : i32, i32
  }
  func.func @transform_2(%arg0: i32) -> (i32, i32) {
    %c0_i32 = arith.constant 0 : i32
    %c0_i32_0 = arith.constant 0 : i32
    %c0_i32_1 = arith.constant 0 : i32
    return %c0_i32, %c0_i32_0 : i32, i32
  }
  func.func @transform_3(%arg0: i32) -> (i32, i32) {
    %c0_i32 = arith.constant 0 : i32
    %c0_i32_0 = arith.constant 0 : i32
    return %arg0, %c0_i32 : i32, i32
  }
}

</mosaic_0001>

<bundles_post_ra>
// kernel: tpu_custom_call.1
= control target key start
LH: loop header
LB: loop body
LE: loop exit
PB: predicated region body
PF: predicated region fallthrough
CT: control target
= control target key end

     0   :  { %v160_v1 = vmov 0.0   ;;  %vm161_vm0 = vmmov 0   ;;  %s204_s0 = inlined_call_operand.vmem [shape: f32[4,32], index: 0, kind: input, shape index: {}]   ;;  %s205_s1 = inlined_call_operand.vmem [shape: f32[32,8], index: 1, kind: input, shape index: {}]   ;;  %s206_s2 = inlined_call_operand.vmem [shape: f32[1,8], index: 2, kind: input, shape index: {}]   ;;  %s207_s3 = inlined_call_operand.hbm [shape: f32[4,8], index: 3, kind: output, shape index: {}]  }
   0x1   :  { %v19_v0 = vld [vmem:[%s205_s1 + $0x18] sm:$0xff]  ;;  %124 = vmatprep.subr.mxu0 %v160_v1  ;;  %v18_v2 = vld [vmem:[%s205_s1 + $0x10] sm:$0xff]  ;;  %132 = vmatprep.mubr.msk.f32.mxu0 %vm161_vm0, %v160_v1 }
   0x2   :  { %125 = vmatpush3.msra.mxu0 %v19_v0 }
   0x3   :  { %8 = vsyncpa [#allocation3], 0  ;;  %126 = vmatprep.subr.mxu0 %v160_v1  ;;  %v17_v3 = vld [vmem:[%s205_s1 + $0x8] sm:$0xff]  ;;  %v16_v4 = vld [vmem:[%s205_s1] sm:$0xff]  ;;  %vm27_vm1 = vcmask 261120   ;;  %s162_s24 = smov [#allocation2]  }
   0x4   :  { %127 = vmatpush3.msra.mxu0 %v18_v2  ;;  %v15_v5 = vld [vmem:[%s204_s0] sm:$0xf]  ;;  %s109_s25 = sshll.u32 %s162_s24, 4  ;;  %vm101_vm2 = vcmask 60416   ;;  %s110_s25 = int_to_ptr.vmem [resolvable:$true] %s109_s25 }
   0x5   :  { %128 = vmatprep.subr.mxu0 %v160_v1  ;;  %v117_v6 = vld [vmem:[%s206_s2] ss:$0 sm:$0xff]  ;;  %s138_s1 = scalar_lea.vmem %s110_s25, 64  ;;  %p143_p1 = scmp.lt.s32.totalorder %s110_s25, %s110_s25 }
   0x6   :  { %129 = vmatpush3.msra.mxu0 %v17_v3  ;;  %p139_p0 = scmp.ne.s32.totalorder %s110_s25, %s138_s1  ;;  %p144_p2 = scmp.lt.s32.totalorder %s138_s1, %s138_s1 }
   0x7   :  { %130 = vmatprep.subr.mxu0 %v160_v1 }
   0x8   :  { %131 = vmatpush3.msra.mxu0 %v16_v4  ;;  %p145_p3 = por %p144_p2, %p143_p1 }
   0x9   :  { %133 = vmatmul.mubr.msk.f32.vlgmr.msra.gmra.mxu0 %vm27_vm1, %v15_v5 }
   0xa   :  { %p146_p4 = pnand %p145_p3, %p139_p0 }
  0xc9   :  { %v97_v7 = vpop.f32.mrf.mxu0 }
  0xca   :  { %v98_v8 = vadd.f32 %v117_v6, %v97_v7 }
  0xcb   :  { %v134_v9 = vpop.f32.mrf.mxu0 }
  0xcc   :  { %102 = vst.msk [vmem:[#allocation2] sm:$0xf] %vm101_vm2, %v98_v8 }
  0xcd   :  { %149 = shalt.err (!%p146_p4)
}
  0xce   :  { %112 = dma.vmem_to_hbm [thread:$0]  %s110_s25, 64, %s207_s3, [#allocation3]  }
  0xcf   :  { %158 = dma.done.wait [#allocation3], 64  }
  0xd0   :  { %159 = vsyncadd [#allocation3], 4294967232 }
  0xd1   :  { %116 = vsyncpa [#allocation3], 1 }

</bundles_post_ra>
